<compile_context>
chip_gen: v6e
topology: v6e:2x2x1
jax: 0.10.0
libtpu: 0.0.40
codegen_flags: <defaults>
</compile_context>

<pallas_src>
import jax
import jax.numpy as jnp
from jax import lax
from jax.experimental import pallas as pl
from jax.experimental.pallas import tpu as pltpu


def _mfm_kernel(p_ref, w_ref, b_ref, o_ref):
    # p_ref: (1, K, T)   im2col patches for one batch element / spatial tile
    # w_ref: (2C, K)     conv weights, K = KH*KW*Cin, (kh, kw, cin) ordering
    # b_ref: (2C, 1)     bias, f32 (sublane vector, broadcast over lanes)
    # o_ref: (1, C, T)   MFM output tile (NCHW flattened: lanes = spatial)
    C = o_ref.shape[1]
    acc = jnp.dot(w_ref[...], p_ref[0],
                  preferred_element_type=jnp.float32)        # (2C, T), f32 acc
    acc = acc + b_ref[...]                                   # (2C, 1) broadcast
    # Max-Feature-Map: elementwise max of the two channel halves, f32, then cast.
    o_ref[0] = jnp.maximum(acc[:C, :], acc[C:, :]).astype(o_ref.dtype)


def _pick_spatial_tile(hw, k, c, itemsize, vmem_budget_bytes=12 << 20):
    """Largest multiple-of-128 divisor of HW whose working set fits the budget.

    Working set per grid step (double-buffered pipeline):
        patches block : K * T * itemsize * 2
        output block  : C * T * itemsize * 2
    (weights/bias are resident and small; leave them out of the per-tile term).
    Falls back to full HW when HW is not a multiple of 128 (full-dim blocks are
    always legal) or when no divisor fits.
    """
    if hw % 128 != 0:
        return hw
    per_lane = 2 * (k + c) * itemsize        # bytes per spatial element in flight
    max_t = max(128, vmem_budget_bytes // max(per_lane, 1))
    if hw <= max_t:
        return hw
    t = (max_t // 128) * 128
    while t >= 128:
        if hw % t == 0:
            return t
        t -= 128
    return hw


def mfm_conv(x_nchw, w_oihw, bias, *, padding=1):
    """MFM conv forward. x_nchw: (N, Cin, H, W); w_oihw: (2C, Cin, KH, KW)."""
    N, Cin, H, W = x_nchw.shape
    two_c, _, KH, KW = w_oihw.shape
    C = two_c // 2
    HW = H * W
    K = KH * KW * Cin

    # im2col in the wrapper (pad + gather fused by XLA): (N, KH*KW*Cin, H*W),
    # K ordered (kh, kw, cin). All relayout work stays out of the kernel.
    xp = jnp.pad(
        x_nchw, ((0, 0), (0, 0), (padding, padding), (padding, padding))
    )
    taps = [xp[:, :, kh:kh + H, kw:kw + W]            # each (N, Cin, H, W)
            for kh in range(KH) for kw in range(KW)]
    patches = jnp.stack(taps, axis=1).reshape(N, K, HW)

    # (O, I, KH, KW) -> (O, KH, KW, I) -> (O, K)   [same (kh, kw, cin) order]
    w2d = jnp.transpose(w_oihw, (0, 2, 3, 1)).reshape(two_c, K)
    b2d = bias.reshape(two_c, 1).astype(jnp.float32)

    T = _pick_spatial_tile(HW, K, C, jnp.dtype(x_nchw.dtype).itemsize)
    grid = (N, HW // T)

    out = pl.pallas_call(
        _mfm_kernel,
        out_shape=jax.ShapeDtypeStruct((N, C, HW), x_nchw.dtype),
        grid_spec=pltpu.PrefetchScalarGridSpec(
            num_scalar_prefetch=0,
            grid=grid,
            in_specs=[
                pl.BlockSpec((1, K, T), lambda n, t: (n, 0, t)),
                pl.BlockSpec((two_c, K), lambda n, t: (0, 0)),
                pl.BlockSpec((two_c, 1), lambda n, t: (0, 0)),
            ],
            out_specs=pl.BlockSpec((1, C, T), lambda n, t: (n, 0, t)),
        ),
        compiler_params=pltpu.CompilerParams(
            dimension_semantics=("parallel", "parallel"),
        ),
    )(patches, w2d, b2d)

    # (N, C, H*W) is already NCHW flattened — no transpose needed.
    return out.reshape(N, C, H, W)


def _reference(x_nchw, w_oihw, bias):
    """Pure-JAX reference matching the PyTorch module."""
    y = lax.conv_general_dilated(
        x_nchw.astype(jnp.float32),
        w_oihw.astype(jnp.float32),
        window_strides=(1, 1),
        padding=((1, 1), (1, 1)),
        dimension_numbers=("NCHW", "OIHW", "NCHW"),
    ) + bias.astype(jnp.float32)[None, :, None, None]
    C = w_oihw.shape[0] // 2
    return jnp.maximum(y[:, :C], y[:, C:]).astype(x_nchw.dtype)


if __name__ == "__main__":
    # Small shapes consistent with mfm(type=1): N=2, Cin=4, H=W=16, out_channels=4.
    N, Cin, H, W = 2, 4, 16, 16
    out_channels = 4
    KH = KW = 3

    key = jax.random.PRNGKey(0)
    kx, kw, kb = jax.random.split(key, 3)
    x = jax.random.normal(kx, (N, Cin, H, W), dtype=jnp.float32)
    # Deterministic synthetic parameters (shapes from nn.Conv2d(Cin, 2*out, 3)).
    w = jax.random.normal(kw, (2 * out_channels, Cin, KH, KW), dtype=jnp.float32) * 0.1
    b = jax.random.normal(kb, (2 * out_channels,), dtype=jnp.float32) * 0.1

    out = mfm_conv(x, w, b)
    out = jax.block_until_ready(out)

    ref = _reference(x, w, b)
    assert out.shape == (N, out_channels, H, W), out.shape
    assert jnp.allclose(out, ref, atol=1e-4, rtol=1e-4), "mismatch vs reference"

    print("KERNEL_OK")
</pallas_src>

<mosaic_0001>
module attributes {stable_mosaic.version = 11 : i64} {
  func.func @_mfm_kernel(%arg0: i32, %arg1: i32, %arg2: memref<1x36x256xf32, #tpu.memory_space<vmem>>, %arg3: memref<8x36xf32, #tpu.memory_space<vmem>>, %arg4: memref<8x1xf32, #tpu.memory_space<vmem>>, %arg5: memref<1x4x256xf32, #tpu.memory_space<vmem>>) attributes {dimension_semantics = [#tpu.dimension_semantics<parallel>, #tpu.dimension_semantics<parallel>], iteration_bounds = array<i64: 2, 1>, scalar_prefetch = 0 : i64, scratch_operands = 0 : i64, tpu.core_type = #tpu.core_type<tc>, window_params = [{transform_indices = @transform_0, window_bounds = array<i64: 1, 36, 256>}, {pipeline_mode = #tpu.pipeline_mode<synchronous>, transform_indices = @transform_1, window_bounds = array<i64: 8, 36>}, {pipeline_mode = #tpu.pipeline_mode<synchronous>, transform_indices = @transform_2, window_bounds = array<i64: 8, 1>}, {transform_indices = @transform_3, window_bounds = array<i64: 1, 4, 256>}]} {
    %c0 = arith.constant 0 : index
    %c0_0 = arith.constant 0 : index
    %0 = vector.load %arg3[%c0, %c0_0] : memref<8x36xf32, #tpu.memory_space<vmem>>, vector<8x36xf32>
    %c0_1 = arith.constant 0 : index
    %c0_2 = arith.constant 0 : index
    %c0_3 = arith.constant 0 : index
    %1 = vector.load %arg2[%c0_1, %c0_2, %c0_3] : memref<1x36x256xf32, #tpu.memory_space<vmem>>, vector<1x36x256xf32>
    %2 = vector.shape_cast %1 : vector<1x36x256xf32> to vector<36x256xf32>
    %cst = arith.constant dense<0.000000e+00> : vector<8x256xf32>
    %3 = tpu.matmul %0, %2, %cst {dimension_numbers = #tpu.dot_dimension_numbers<[1], [0], [0], [1], [0, 0, 1, 1], [], []>} : vector<8x36xf32>, vector<36x256xf32>, vector<8x256xf32> -> vector<8x256xf32>
    %c0_4 = arith.constant 0 : index
    %c0_5 = arith.constant 0 : index
    %4 = vector.load %arg4[%c0_4, %c0_5] : memref<8x1xf32, #tpu.memory_space<vmem>>, vector<8x1xf32>
    %5 = vector.broadcast %4 : vector<8x1xf32> to vector<8x256xf32>
    %6 = arith.addf %3, %5 : vector<8x256xf32>
    %7 = vector.extract_strided_slice %6 {offsets = [0, 0], sizes = [4, 256], strides = [1, 1]} : vector<8x256xf32> to vector<4x256xf32>
    %8 = vector.extract_strided_slice %6 {offsets = [4, 0], sizes = [4, 256], strides = [1, 1]} : vector<8x256xf32> to vector<4x256xf32>
    %9 = arith.maximumf %7, %8 : vector<4x256xf32>
    %c0_6 = arith.constant 0 : index
    %c0_7 = arith.constant 0 : index
    %c0_8 = arith.constant 0 : index
    %10 = vector.load %arg5[%c0_6, %c0_7, %c0_8] : memref<1x4x256xf32, #tpu.memory_space<vmem>>, vector<1x4x256xf32>
    %11 = vector.shape_cast %10 : vector<1x4x256xf32> to vector<4x256xf32>
    %12 = vector.shape_cast %9 : vector<4x256xf32> to vector<1x4x256xf32>
    tpu.vector_store %arg5[%c0_6, %c0_7, %c0_8], %12 {strides = array<i32>} : memref<1x4x256xf32, #tpu.memory_space<vmem>>, vector<1x4x256xf32>,
    return
  }
  func.func @transform_0(%arg0: i32, %arg1: i32) -> (i32, i32, i32) {
    %c0_i32 = arith.constant 0 : i32
    %c0_i32_0 = arith.constant 0 : i32
    return %arg0, %c0_i32, %arg1 : i32, i32, i32
  }
  func.func @transform_1(%arg0: i32, %arg1: i32) -> (i32, i32) {
    %c0_i32 = arith.constant 0 : i32
    %c0_i32_0 = arith.constant 0 : i32
    %c0_i32_1 = arith.constant 0 : i32
    return %c0_i32, %c0_i32_0 : i32, i32
  }
  func.func @transform_2(%arg0: i32, %arg1: i32) -> (i32, i32) {
    %c0_i32 = arith.constant 0 : i32
    %c0_i32_0 = arith.constant 0 : i32
    %c0_i32_1 = arith.constant 0 : i32
    return %c0_i32, %c0_i32_0 : i32, i32
  }
  func.func @transform_3(%arg0: i32, %arg1: i32) -> (i32, i32, i32) {
    %c0_i32 = arith.constant 0 : i32
    %c0_i32_0 = arith.constant 0 : i32
    return %arg0, %c0_i32, %arg1 : i32, i32, i32
  }
}

</mosaic_0001>

<bundles_post_ra>
// kernel: tpu_custom_call.1
= control target key start
LH: loop header
LB: loop body
LE: loop exit
PB: predicated region body
PF: predicated region fallthrough
CT: control target
= control target key end

     0   :  { %8 = vsyncpa [#allocation3], 0  ;;  %s686_s0 = inlined_call_operand.vmem [shape: f32[2,36,256], index: 0, kind: input, shape index: {}]   ;;  %s687_s1 = inlined_call_operand.vmem [shape: f32[8,36], index: 1, kind: input, shape index: {}]   ;;  %s688_s2 = inlined_call_operand.vmem [shape: f32[8,1], index: 2, kind: input, shape index: {}]   ;;  %s689_s3 = inlined_call_operand.hbm [shape: f32[2,4,256], index: 3, kind: output, shape index: {}]  }
   0x1   :  { %10 = vsyncpa [#allocation3 + $0x1], 0  ;;  %s581_s12 = smov 0   ;;  %s583_s13 = smov 0  }
   0x2   :  { %s585_s14 = smov 0   ;;  %s587_s15 = smov 0  }
   0x3   :  { %s589_s16 = smov 0   ;;  %s591_s17 = smov 0  }
   0x4 LB: > { %s405_s18 = sadd.s32 4294967295, %s556_s17   ;;  %s406_s19 = sadd.s32 4294967294, %s556_s17   ;;  %s556_s17 = sphi %s591_s17, %s16_s17   ;;  %s552_s16 = sphi %s589_s16, %s696_s16   ;;  %s548_s15 = sphi %s587_s15, %s695_s15   ;;  %s544_s14 = sphi %s585_s14, %s694_s14   ;;  %s540_s13 = sphi %s583_s13, %s693_s13   ;;  %s536_s12 = sphi %s581_s12, %s692_s12  }
   0x5   : > { %s28_s20 = sadd.s32 1, %s552_s16  ;;  %s107_s21 = sadd.s32 1, %s544_s14 }
   0x6   : > { %p30_p0 = scmp.ge.s32.totalorder %s28_s20, 2  ;;  %p117_p1 = scmp.ne.s32.totalorder %s544_s14, %s540_s13 }
   0x7   : > { %p118_p2 = scmp.eq.s32.totalorder %s405_s18, 1  ;;  %p123_p3 = scmp.ne.s32.totalorder %s540_s13, %s536_s12 }
   0x8   : > { %s698_s20 = smov (%p30_p0, %s28_s20), 0  ;;  %p124_p5 = scmp.eq.s32.totalorder %s406_s19, 1 }
   0x9   : > { %p621_p4 = por %p118_p2, %p117_p1  ;;  %s102_s23 = ssub.s32 %s552_s16, %s698_s20 }
   0xa   : > { %p409_p6 = scmp.ge.s32.totalorder %s556_s17, 1  ;;  %p105_p7 = scmp.eq.s32.totalorder %s102_s23, 0 }
   0xb   : > { %p628_p8 = por %p124_p5, %p123_p3  ;;  %p161_p9 = scmp.lt.s32.totalorder %s556_s17, 3 }
   0xc   : > { %s634_s25 = scalar_select %p105_p7, %s544_s14, %s107_s21  }
   0xd   : > { %p162_p10 = pnand %p409_p6, %p161_p9 }
   0xe   : > { %p190_p11 = scmp.lt.s32.totalorder (!%p162_p10), %s548_s15, 1  ;;  %s186_s8 = sand.u32 (!%p162_p10), 1, %s540_s13  }
   0xf   : > { %165 = sbr.rel (%p162_p10) target bundleno = 252 (0xfc), region = 32  ;;  %s410_s9 = sshll.u32 (!%p162_p10), %s186_s8, 3 }
  0x10   : > { %s420_s10 = sshll.u32 (!%p162_p10), %s548_s15, 7  ;;  %s188_s11 = scalar_lea.vmem (!%p162_p10), [#allocation2], %s410_s9 }
  0x11   : > { %s329_s18 = sshll.u32 (!%p162_p10), %s188_s11, 4  ;;  %s327_s23 = scalar_lea.hbm (!%p162_p10), %s689_s3, %s420_s10  ;;  %s330_s18 = int_to_ptr.vmem [resolvable:$true] %s329_s18 }
  0x12   : > { %s313_s26 = scalar_lea.sflag (!%p162_p10), [#allocation3], %s186_s8  ;;  %s480_s27 = scalar_lea.vmem (!%p162_p10), %s330_s18, 128 }
  0x13   : > { %p481_p12 = scmp.ne.s32.totalorder (!%p162_p10), %s330_s18, %s480_s27 }
  0x14   : > { %v558_v0 = vmov 0.0   ;;  %v559_v1 = vmov 0   ;;  %v211_v2 = vld [vmem:[%s688_s2] sm:$0xff]  ;;  %s191_s28 = scalar_select %p190_p11, %s548_s15, 1  ;;  %vm221_vm0 = vcmask 1043456   ;;  %vm217_vm1 = vcmask 293888  }
  0x15   : > { %292 = vmatprep.mubr.f32.mxu0 %v558_v0  ;;  %479 = vset.pattern.permute.xlu0 %v559_v1  ;;  %v200_v13 = vld [vmem:[%s687_s1] sm:$0xff]  ;;  %p482_p13 = pnand %p481_p12, %p621_p4 }
  0x16   : > { %214 = vperm.xlu0 %479, %v211_v2   ;;  %s421_s29 = smul.u32 80, %s191_s28  ;;  %s560_s28 = smov [#allocation2]  }
  0x17   : > { %p483_p0 = pneg %p482_p13 }
  0x18   : > { %s197_s5 = scalar_lea.vmem %s686_s0, %s421_s29  ;;  %s484_s29 = sshll.u32 %s560_s28, 4  ;;  %s485_s29 = int_to_ptr.vmem [resolvable:$false] %s484_s29 }
  0x19   : > { %v210_v3 = vld [vmem:[%s197_s5 + $0x48] sm:$0xf]  ;;  %v209_v4 = vld [vmem:[%s197_s5 + $0x40] sm:$0xf]  ;;  %v208_v5 = vld [vmem:[%s197_s5 + $0x38] sm:$0xff]  ;;  %s486_s15 = scalar_lea.vmem %s485_s29, 256  ;;  %p487_p1 = scmp.lt.s32.totalorder %s330_s18, %s485_s29 }
  0x1a   : > { %412 = vmatprep.subr.msk.mxu0 %vm221_vm0, %v210_v3  ;;  %v207_v6 = vld [vmem:[%s197_s5 + $0x30] sm:$0xff]  ;;  %v206_v7 = vld [vmem:[%s197_s5 + $0x28] sm:$0xff]  ;;  %v205_v8 = vld [vmem:[%s197_s5 + $0x20] sm:$0xff]  ;;  %p488_p2 = scmp.lt.s32.totalorder %s486_s15, %s480_s27 }
  0x1b   : > { %413 = vmatpush1.msk.msra.mxu0 %vm221_vm0, %v209_v4  ;;  %v204_v9 = vld [vmem:[%s197_s5 + $0x18] sm:$0xff]  ;;  %v203_v10 = vld [vmem:[%s197_s5 + $0x10] sm:$0xff]  ;;  %v202_v11 = vld [vmem:[%s197_s5 + $0x8] sm:$0xff] }
  0x1c   : > { %252 = vmatprep.subr.mxu0 %v208_v5  ;;  %v201_v12 = vld [vmem:[%s197_s5] sm:$0xff]  ;;  %p489_p3 = por %p488_p2, %p487_p1 }
  0x1d   : > { %253 = vmatpush1.msra.mxu0 %v207_v6 }
  0x1e   : > { %254 = vmatprep.subr.mxu0 %v206_v7  ;;  %p490_p5 = pnand %p489_p3, %p483_p0 }
  0x1f   : > { %255 = vmatpush1.msra.mxu0 %v205_v8 }
  0x20   : > { %256 = vmatprep.subr.mxu0 %v204_v9 }
  0x21   : > { %257 = vmatpush1.msra.mxu0 %v203_v10 }
  0x22   : > { %258 = vmatprep.subr.mxu0 %v202_v11 }
  0x23   : > { %259 = vmatpush1.msra.mxu0 %v201_v12 }
  0x24   : > { %414 = vmatmul.mubr.msk.f32.vlgmr.msra.gmra.mxu0 %vm217_vm1, %v200_v13 }
  0x91   : > { %v215_v14 = vpop.permute.xlu0 %214 }
  0xe4   : > { %v294_v15 = vpop.f32.mrf.mxu0 }
  0xe5   : > { %v295_v16 = vadd.f32 %v294_v15, %v215_v14 }
  0xe6   : > { %v296_v17 = vpop.f32.mrf.mxu0 }
  0xe7   : > { %v301_v18 = vrot.slane %v295_v16, 4  ;;  %v297_v19 = vadd.f32 %v296_v17, %v215_v14 }
  0xe9   : > { %v302_v20 = vrot.slane %v297_v19, 4  ;;  %v305_v21 = vmax.f32 %v295_v16, %v301_v18 }
  0xeb   : > { %v306_v22 = vmax.f32 %v297_v19, %v302_v20 }
  0xed   : > { %v309_v23 = vcombine.low %v305_v21, %v306_v22 }
  0xef   : > { %311 = vst [vmem:[%s188_s11] sm:$0xff] %v309_v23 }
  0xf0   : > { %493 = shalt.err (!%p490_p5)
}
  0xf1   : > { %s494_s30 = scalar_lea.hbm %s327_s23, 128  ;;  %s498_s6 = scalar_lea.hbm %s689_s3, 256 }
  0xf2   : > { %p495_p6 = scmp.ne.s32.totalorder %s327_s23, %s494_s30  ;;  %p499_p10 = scmp.lt.s32.totalorder %s327_s23, %s689_s3 }
  0xf3   : > { %p500_p11 = scmp.lt.s32.totalorder %s498_s6, %s494_s30 }
  0xf4   : > { %p496_p7 = pnand %p495_p6, %p621_p4 }
  0xf5   : > { %p501_p12 = por %p500_p11, %p499_p10 }
  0xf6   : > { %p497_p9 = pneg %p496_p7 }
  0xf8   : > { %p502_p13 = pnand %p501_p12, %p497_p9 }
  0xfa   : > { %505 = shalt.err (!%p502_p13)
}
  0xfb   : > { %422 = dma.vmem_to_hbm [thread:$0]  (%p621_p4), %s330_s18, 128, %s327_s23, %s313_s26  }
  0xfc PF: > { %p428_p0 = scmp.ge.s32.totalorder %s556_s17, 2  ;;  %s341_s9 = sand.u32 1, %s536_s12  }
  0xfd   : > { %s342_s10 = scalar_lea.sflag [#allocation3], %s341_s9 }
  0xfe   : > { %p425_p1 = pnand %p428_p0, %p628_p8 }
 0x100   : > { %p426_p2 = pneg %p425_p1 }
 0x102   : > { %531 = dma.done.wait (%p426_p2), %s342_s10, 128  }
 0x103   : > { %533 = vsyncadd (%p426_p2), %s342_s10, 4294967168  ;;  %s16_s17 = sadd.s32 1, %s556_s17   ;;  %s692_s12 = smov %s540_s13 }
 0x104   : > { %p13_p3 = scmp.ge.s32.totalorder %s16_s17, 4   ;;  %s693_s13 = smov %s544_s14 }
 0x105   : > { %s694_s14 = smov %s634_s25  ;;  %s695_s15 = smov %s552_s16 }
 0x106   : > { %s696_s16 = smov %s698_s20  ;;  %15 = sbr.rel (!%p13_p3) target bundleno = 4 (0x4), region = 67 }
 0x10b   :  { %347 = vsyncpa [#allocation3], 1 }
 0x10c   :  { %349 = vsyncpa [#allocation3 + $0x1], 1 }

</bundles_post_ra>
